<compile_context>
chip_gen: v6e
topology: v6e:2x2x1
jax: 0.10.0
libtpu: 0.0.40
codegen_flags: <defaults>
</compile_context>

<pallas_src>
import functools

import numpy as np

import jax
import jax.numpy as jnp
from jax import lax
from jax.experimental import pallas as pl
from jax.experimental.pallas import tpu as pltpu


# ---------------------------------------------------------------------------
# small helpers
# ---------------------------------------------------------------------------
def _srl(v, nbits):
    """Logical right shift that is safe for signed int32 on every backend."""
    return lax.shift_right_logical(v, jnp.full(v.shape, nbits, v.dtype))


def _hash_bits(counter, seed):
    """Stateless 32-bit integer hash (lowbias32-style) of counter + seed."""
    h = counter ^ (seed * jnp.int32(0x27D4EB2F))
    h = (_srl(h, 16) ^ h) * jnp.int32(0x045D9F3B)
    h = (_srl(h, 16) ^ h) * jnp.int32(0x045D9F3B)
    h = _srl(h, 16) ^ h
    return h


def _round_up(v, m):
    return (v + m - 1) // m * m


@functools.lru_cache(maxsize=1)
def _vmem_capacity_bytes():
    try:
        cap = getattr(pltpu.get_tpu_info(), "vmem_capacity_bytes", None)
        if cap:
            return int(cap)
    except Exception:
        pass
    return 64 << 20            # conservative default (v7x per-TensorCore VMEM)


@functools.lru_cache(maxsize=1)
def _roll_shift_is_source_offset():
    """True iff pltpu.roll(x, s, axis)[j] == x[j + s] (opposite of jnp.roll).

    Determined once with a tiny probe kernel so the tap alignment is correct
    regardless of the rotate direction of the backend in use.
    """
    def probe(x_ref, o_ref):
        o_ref[...] = pltpu.roll(x_ref[...], shift=1, axis=1)

    x = jnp.tile(jnp.arange(128, dtype=jnp.float32), (8, 1))
    y = pl.pallas_call(
        probe, out_shape=jax.ShapeDtypeStruct((8, 128), jnp.float32))(x)
    return bool(jax.device_get(y)[0, 0] == 1.0)


@functools.lru_cache(maxsize=None)
def _selection_matrix(th, kh, kw, Wo, presum_taps):
    """Compaction matrix for one Ho-chunk of `th` output rows.

    Shape (th*kh*Wo*kw, th*Wo).  If `presum_taps` (avgpool), every input
    position maps to its window's output column (K ones per column).
    Otherwise (maxpool) only the tap-0 position of each window is selected
    (exactly one nonzero per output column -> the matmul is an exact gather).
    """
    Wt = Wo * kw
    lin, lout = th * kh * Wt, th * Wo
    sel = np.zeros((lin, lout), dtype=np.float32)
    i = np.arange(lin)
    hi, wi = i // Wt, i % Wt
    col = (hi // kh) * Wo + (wi // kw)
    if presum_taps:
        sel[i, col] = 1.0
    else:
        tap0 = (hi % kh == 0) & (wi % kw == 0)
        sel[i[tap0], col[tap0]] = 1.0
    return sel


# ---------------------------------------------------------------------------
# kernel
# ---------------------------------------------------------------------------
def _pool_dropout_kernel(seed_ref, x_ref, sel_ref, o_ref, *,
                         roll_shifts, pool_type, inv_count, p, training,
                         tm, chunk_lout, l_out_total, use_highest):
    x = x_ref[...]
    if use_highest:                         # f32 input: exact MXU gather
        x = x.astype(jnp.float32)
    precision = lax.Precision.HIGHEST if use_highest else None

    if pool_type == "maxpool":
        # Fold the K window taps onto the tap-0 lanes with XLU rotations and
        # VPU max (both units have slack), then compact with ONE one-hot
        # matmul instead of K per-tap matmuls.
        acc = x
        for s in roll_shifts:
            acc = jnp.maximum(acc, pltpu.roll(x, shift=s, axis=1))
        pooled = jnp.dot(acc, sel_ref[...], precision=precision,
                         preferred_element_type=jnp.float32)
    else:                                   # avgpool: pre-summed 0/1 matrix
        pooled = jnp.dot(x, sel_ref[...], precision=precision,
                         preferred_element_type=jnp.float32)
        pooled = pooled * inv_count

    # Dropout (training only): inverted dropout with a stateless integer hash
    # of the global element index (portable; no pltpu.prng_* required).
    if training and p >= 1.0:
        pooled = jnp.zeros_like(pooled)     # PyTorch p=1.0 zeroes everything
    elif training and p > 0.0:
        row0 = pl.program_id(0) * tm
        col0 = pl.program_id(1) * chunk_lout
        rows = lax.broadcasted_iota(jnp.int32, pooled.shape, 0) + row0
        cols = lax.broadcasted_iota(jnp.int32, pooled.shape, 1) + col0
        counter = rows * jnp.int32(l_out_total) + cols      # global element id
        bits = _hash_bits(counter, seed_ref[0])
        r24 = _srl(bits, 8)                                  # uniform [0, 2^24)
        thr = int(round(p * (1 << 24)))
        keep = r24 >= jnp.int32(thr)                         # P(keep) = 1 - p
        pooled = jnp.where(keep, pooled * (1.0 / (1.0 - p)), 0.0)

    o_ref[...] = pooled.astype(o_ref.dtype)


# ---------------------------------------------------------------------------
# tiling choices
# ---------------------------------------------------------------------------
def _choose_out_chunk(Ho, Wo, kh, kw, sel_budget_bytes, sel_itemsize):
    """Chunk the output over Ho so the selection operand stays VMEM-bounded.

    Returns th (output rows per chunk); th == Ho means a single chunk.
    Chunks < Ho must keep the x / out block lane dims multiples of 128.
    """
    Wt = Wo * kw

    def sel_bytes(th):
        return (th * kh * Wt) * (th * Wo) * sel_itemsize

    if sel_bytes(Ho) <= sel_budget_bytes:
        return Ho
    best = Ho
    for th in range(Ho - 1, 0, -1):
        if Ho % th:
            continue
        if (th * kh * Wt) % 128 or (th * Wo) % 128:
            continue
        best = th
        if sel_bytes(th) <= sel_budget_bytes:
            return th
    return best                              # smallest lane-legal chunk


def _choose_row_tile(rows, per_row_bytes, budget_bytes):
    """Row tile: multiple of 8, within the VMEM budget, >= 2 grid steps when
    rows allow it (DMA/compute overlap + v7x megacore sharding), divisor of
    rows when possible (padding only as a rare fallback)."""
    if rows <= 8:
        return rows, rows                     # single tiny block (full dim)
    cap = budget_bytes // max(per_row_bytes, 1)
    cap = min(cap, 4096, _round_up(rows, 8))
    cap = max(8, cap - cap % 8)
    two_step = (rows // 2) // 8 * 8           # force >= 2 grid steps
    if two_step >= 8:
        cap = min(cap, two_step)
    if rows % 8 == 0:
        for tm in range(cap, 7, -8):          # largest 8-multiple divisor <= cap
            if rows % tm == 0:
                return tm, rows
    return cap, _round_up(rows, cap)          # fallback: pad rows


# ---------------------------------------------------------------------------
# wrapper
# ---------------------------------------------------------------------------
def pooling_block(x, *, kernel_size=(1, 2), dropout=0.5, pool_type="maxpool",
                  training=False, seed=0):
    """Forward pass of PoolingBlock.  x: (N, C, H, W) float array (NCHW)."""
    if pool_type not in ("maxpool", "avgpool"):
        raise ValueError("pool type error")
    if isinstance(kernel_size, int):
        kernel_size = (kernel_size, kernel_size)
    kh, kw = kernel_size
    N, C, H, W = x.shape
    Ho, Wo = H // kh, W // kw
    Ht, Wt = Ho * kh, Wo * kw
    K = kh * kw

    # Truncate to whole pooling windows (PyTorch default ceil_mode=False).
    if (Ht, Wt) != (H, W):
        x = x[:, :, :Ht, :Wt]

    rows, l_in, l_out = N * C, Ht * Wt, Ho * Wo
    x2 = x.reshape(rows, l_in)                      # free, contiguous reshape

    use_highest = x.dtype != jnp.bfloat16           # bf16 fast path otherwise
    sel_dtype = jnp.float32 if use_highest else jnp.bfloat16
    sel_itemsize = jnp.dtype(sel_dtype).itemsize
    in_itemsize = jnp.dtype(x.dtype).itemsize

    cap = _vmem_capacity_bytes()
    th = _choose_out_chunk(Ho, Wo, kh, kw, cap // 8, sel_itemsize)
    n_chunks = Ho // th
    chunk_lin, chunk_lout = th * kh * Wt, th * Wo

    sel = jnp.asarray(_selection_matrix(th, kh, kw, Wo, pool_type == "avgpool"),
                      dtype=sel_dtype)
    sel_resident = 2 * sel.size * sel_itemsize      # double-buffered by Pallas

    # Per-row VMEM: double-buffered in/out tiles + in-kernel temporaries
    # (f32 upcast, rolled copy, accumulator, pooled f32, dropout iotas/hash).
    per_row = (2 * in_itemsize * (chunk_lin + chunk_lout)
               + 4 * 4 * chunk_lin + 8 * 4 * chunk_lout)
    tile_budget = (cap * 3) // 8
    tm, rows_pad = _choose_row_tile(rows, per_row,
                                    max(tile_budget - sel_resident, 2 << 20))
    if rows_pad != rows:
        x2 = jnp.pad(x2, ((0, rows_pad - rows), (0, 0)))
    grid = (rows_pad // tm, n_chunks)

    # Tap-fold rotation amounts (maxpool only), direction-corrected.
    roll_shifts = ()
    if pool_type == "maxpool" and K > 1:
        offsets = [dh * Wt + dw for dh in range(kh) for dw in range(kw)][1:]
        if _roll_shift_is_source_offset():
            roll_shifts = tuple(off % chunk_lin for off in offsets)
        else:
            roll_shifts = tuple((chunk_lin - off) % chunk_lin for off in offsets)

    kernel = functools.partial(
        _pool_dropout_kernel,
        roll_shifts=roll_shifts, pool_type=pool_type, inv_count=1.0 / K,
        p=float(dropout), training=bool(training),
        tm=tm, chunk_lout=chunk_lout, l_out_total=l_out,
        use_highest=use_highest)

    seed_arr = jnp.asarray([int(seed) & 0x7FFFFFFF], dtype=jnp.int32)

    cost = pl.CostEstimate(
        flops=2 * rows_pad * chunk_lin * chunk_lout * n_chunks,
        transcendentals=0,
        bytes_accessed=rows_pad * (l_in + l_out) * in_itemsize
        + grid[0] * n_chunks * sel.size * sel_itemsize)

    vmem_needed = tm * per_row + sel_resident + (4 << 20)
    vmem_limit = int(min(max(vmem_needed, 32 << 20), (cap * 4) // 5))

    out = pl.pallas_call(
        kernel,
        out_shape=jax.ShapeDtypeStruct((rows_pad, l_out), x.dtype),
        grid_spec=pltpu.PrefetchScalarGridSpec(
            num_scalar_prefetch=1,
            grid=grid,
            in_specs=[
                pl.BlockSpec((tm, chunk_lin), lambda i, j, s: (i, j)),
                pl.BlockSpec((chunk_lin, chunk_lout), lambda i, j, s: (0, 0)),
            ],
            out_specs=pl.BlockSpec((tm, chunk_lout), lambda i, j, s: (i, j)),
        ),
        compiler_params=pltpu.CompilerParams(
            dimension_semantics=("parallel", "parallel"),
            vmem_limit_bytes=vmem_limit),
        cost_estimate=cost,
    )(seed_arr, x2, sel)

    if rows_pad != rows:
        out = out[:rows]
    return out.reshape(N, C, Ho, Wo)


# ---------------------------------------------------------------------------
# pure-JAX reference + self-test
# ---------------------------------------------------------------------------
def _reference_pool(x, kernel_size=(1, 2), pool_type="maxpool"):
    kh, kw = kernel_size
    N, C, H, W = x.shape
    Ho, Wo = H // kh, W // kw
    xr = x[:, :, : Ho * kh, : Wo * kw].reshape(N, C, Ho, kh, Wo, kw)
    if pool_type == "maxpool":
        return xr.max(axis=(3, 5))
    return xr.astype(jnp.float32).mean(axis=(3, 5)).astype(x.dtype)


if __name__ == "__main__":
    key = jax.random.PRNGKey(0)
    x = jax.random.normal(key, (2, 4, 16, 16), dtype=jnp.float32)

    # Eval mode (dropout = identity): pooling must match the JAX reference.
    for ptype in ("maxpool", "avgpool"):
        y = pooling_block(x, kernel_size=(1, 2), dropout=0.5,
                          pool_type=ptype, training=False)
        y = jax.block_until_ready(y)
        ref = _reference_pool(x, (1, 2), ptype)
        assert y.shape == (2, 4, 16, 8), y.shape
        assert jnp.allclose(y, ref, atol=1e-5, rtol=1e-5), f"{ptype} mismatch"

    # A 2x2 window exercises the multi-tap roll-fold path (K = 4).
    y22 = pooling_block(x, kernel_size=(2, 2), dropout=0.5,
                        pool_type="maxpool", training=False)
    y22 = jax.block_until_ready(y22)
    ref22 = _reference_pool(x, (2, 2), "maxpool")
    assert y22.shape == (2, 4, 8, 8), y22.shape
    assert jnp.allclose(y22, ref22, atol=1e-5, rtol=1e-5), "2x2 maxpool mismatch"

    # Training mode: inverted dropout -> every element is 0 or pooled / (1-p).
    p = 0.5
    y_tr = pooling_block(x, kernel_size=(1, 2), dropout=p,
                         pool_type="maxpool", training=True, seed=1234)
    y_tr = jax.block_until_ready(y_tr)
    ref = _reference_pool(x, (1, 2), "maxpool")
    scaled = ref / (1.0 - p)
    kept = jnp.abs(y_tr - scaled) <= 1e-4 * (1.0 + jnp.abs(scaled))
    dropped = y_tr == 0.0
    assert y_tr.shape == (2, 4, 16, 8)
    assert bool(jnp.all(kept | dropped)), "dropout produced unexpected values"
    n_drop = int(jnp.sum(dropped & ~kept))
    assert 0 < n_drop < y_tr.size, "dropout mask looks degenerate"

    print("KERNEL_OK")
</pallas_src>

<mosaic_0001>
module attributes {stable_mosaic.version = 11 : i64} {
  func.func @probe(%arg0: memref<8x128xf32, #tpu.memory_space<vmem>>, %arg1: memref<8x128xf32, #tpu.memory_space<vmem>>) attributes {dimension_semantics = [], scalar_prefetch = 0 : i64, scratch_operands = 0 : i64, tpu.core_type = #tpu.core_type<tc>} {
    %c0 = arith.constant 0 : index
    %c0_0 = arith.constant 0 : index
    %0 = vector.load %arg0[%c0, %c0_0] : memref<8x128xf32, #tpu.memory_space<vmem>>, vector<8x128xf32>
    %c1_i32 = arith.constant 1 : i32
    %1 = tpu.dynamic_rotate %0 by %c1_i32 dim 1 : vector<8x128xf32>, i32 -> vector<8x128xf32>
    %c0_1 = arith.constant 0 : index
    %c0_2 = arith.constant 0 : index
    %2 = vector.load %arg1[%c0_1, %c0_2] : memref<8x128xf32, #tpu.memory_space<vmem>>, vector<8x128xf32>
    tpu.vector_store %arg1[%c0_1, %c0_2], %1 {strides = array<i32>} : memref<8x128xf32, #tpu.memory_space<vmem>>, vector<8x128xf32>,
    return
  }
}

</mosaic_0001>

<bundles_post_ra>
// kernel: tpu_custom_call.1
= control target key start
LH: loop header
LB: loop body
LE: loop exit
PB: predicated region body
PF: predicated region fallthrough
CT: control target
= control target key end

     0   :  { %6 = vsyncpa [#allocation3], 0  ;;  %s106_s0 = inlined_call_operand.hbm [shape: f32[8,128], index: 0, kind: input, shape index: {}]   ;;  %s107_s1 = inlined_call_operand.hbm [shape: f32[8,128], index: 1, kind: output, shape index: {}]  }
   0x1   :  { %7 = vsyncpa [#allocation4], 0  ;;  %s87_s6 = smov [#allocation2]  }
   0x2   :  { %s14_s7 = sshll.u32 %s87_s6, 4  ;;  %s15_s7 = int_to_ptr.vmem [resolvable:$true] %s14_s7 }
   0x3   :  { %s51_s8 = scalar_lea.vmem %s15_s7, 128  ;;  %p56_p1 = scmp.lt.s32.totalorder %s15_s7, %s15_s7 }
   0x4   :  { %p52_p0 = scmp.ne.s32.totalorder %s15_s7, %s51_s8  ;;  %p57_p2 = scmp.lt.s32.totalorder %s51_s8, %s51_s8 }
   0x6   :  { %p58_p3 = por %p57_p2, %p56_p1 }
   0x8   :  { %p59_p4 = pnand %p58_p3, %p52_p0 }
   0xa   :  { %62 = shalt.err (!%p59_p4)
}
   0xb   :  { %17 = dma.hbm_to_vmem [thread:$0]  %s106_s0, 128, %s15_s7, [#allocation3]  }
   0xc   :  { %83 = dma.done.wait [#allocation3], 128  }
   0xd   :  { %84 = vsyncadd [#allocation3], 4294967168  ;;  %v21_v0 = vld [vmem:[#allocation2] sm:$0xff]  ;;  %s88_s11 = smov 1   ;;  %s89_s12 = smov [#allocation5]  }
   0xe   :  { %22 = vrot.lane.b32.xlu0 %v21_v0, %s88_s11  ;;  %s31_s13 = sshll.u32 %s89_s12, 4  ;;  %s32_s13 = int_to_ptr.vmem [resolvable:$true] %s31_s13 }
   0xf   :  { %s63_s14 = scalar_lea.vmem %s32_s13, 128  ;;  %p68_p6 = scmp.lt.s32.totalorder %s32_s13, %s32_s13 }
  0x10   :  { %p64_p5 = scmp.ne.s32.totalorder %s32_s13, %s63_s14  ;;  %p69_p7 = scmp.lt.s32.totalorder %s63_s14, %s63_s14 }
  0x12   :  { %p70_p8 = por %p69_p7, %p68_p6 }
  0x14   :  { %p71_p9 = pnand %p70_p8, %p64_p5 }
  0x80   :  { %v23_v1 = vpop.permute.xlu0 %22 }
  0x81   :  { %24 = vst [vmem:[#allocation5] sm:$0xff] %v23_v1 }
  0x82   :  { %74 = shalt.err (!%p71_p9)
}
  0x83   :  { %34 = dma.vmem_to_hbm [thread:$0]  %s32_s13, 128, %s107_s1, [#allocation4]  }
  0x84   :  { %85 = dma.done.wait [#allocation4], 128  }
  0x85   :  { %86 = vsyncadd [#allocation4], 4294967168 }
  0x86   :  { %38 = vsyncpa [#allocation3], 1 }
  0x87   :  { %39 = vsyncpa [#allocation4], 1 }

</bundles_post_ra>
